<compile_context>
chip_gen: v7x
topology: tpu7x:2x2x1
jax: 0.10.0
libtpu: 0.0.40
codegen_flags: <defaults>
</compile_context>

<pallas_src>
import functools

import jax
import jax.numpy as jnp
from jax.experimental import pallas as pl
from jax.experimental.pallas import tpu as pltpu


def _la_mlp_kernel(x_ref, w1_ref, b1_ref, w2_ref, b2_ref, o_ref):
    # x_ref : (in_dim,  tile_n)  bf16   -- nodes on the lane axis (streamed)
    # w1_ref: (hidden,  in_dim)  bf16   -- resident (grid-invariant)
    # b1_ref: (hidden,  1)       f32
    # w2_ref: (out_dim, hidden)  bf16   -- resident (grid-invariant)
    # b2_ref: (out_dim, 1)       f32
    # o_ref : (out_dim, tile_n)  f32    -- lane-dense output tile
    h = jnp.dot(w1_ref[...], x_ref[...], preferred_element_type=jnp.float32)
    h = jnp.maximum(h + b1_ref[...], 0.0)                      # f32 bias + ReLU (VPU)
    y = jnp.dot(w2_ref[...], h.astype(jnp.bfloat16),
                preferred_element_type=jnp.float32)
    y = y + b2_ref[...]
    # ELU: y if y > 0 else exp(y) - 1, with the argument clamped so the untaken
    # branch never evaluates exp of a large positive value.
    neg = jnp.exp(jnp.minimum(y, 0.0)) - 1.0
    o_ref[...] = jnp.where(y > 0.0, y, neg).astype(o_ref.dtype)


def _pick_tile_n(n: int) -> int:
    # Aim for >=2 grid steps (v7x has 2 TensorCores) with 128-aligned lane
    # tiles, while keeping tiles big enough (256..1024) that the grid loop is
    # not overhead-dominated. VMEM is never a constraint at these feature dims.
    half = pl.cdiv(pl.cdiv(n, 2), 128) * 128
    return int(max(256, min(1024, half)))


@functools.partial(jax.jit, static_argnames=("tile_n",))
def la_op(x, w1, b1, w2, b2, *, tile_n=None):
    """y = ELU(relu(x @ w1 + b1) @ w2 + b2), computed in a transposed,
    lane-dense layout inside the kernel (nodes on the lane axis)."""
    n, in_dim = x.shape
    hidden = w1.shape[1]
    out_dim = w2.shape[1]
    if tile_n is None:
        tile_n = _pick_tile_n(n)

    grid_n = pl.cdiv(n, tile_n)
    n_pad = grid_n * tile_n

    # Layout plumbing in the wrapper (reviewer-endorsed): pad N to the tile and
    # transpose so the node axis is the last (lane) axis; weights transposed
    # once; matmul operands cast to bf16, biases kept f32.
    xt = jnp.pad(x, ((0, n_pad - n), (0, 0))).T.astype(jnp.bfloat16)   # (in_dim, n_pad)
    w1t = w1.T.astype(jnp.bfloat16)                                    # (hidden, in_dim)
    w2t = w2.T.astype(jnp.bfloat16)                                    # (out_dim, hidden)
    b1t = b1.reshape(hidden, 1).astype(jnp.float32)
    b2t = b2.reshape(out_dim, 1).astype(jnp.float32)

    cost = pl.CostEstimate(
        flops=2 * n_pad * (in_dim * hidden + hidden * out_dim),
        transcendentals=n_pad * out_dim,
        bytes_accessed=(xt.size * 2 + w1t.size * 2 + w2t.size * 2
                        + b1t.size * 4 + b2t.size * 4
                        + n_pad * out_dim * 4),
    )

    out_t = pl.pallas_call(
        _la_mlp_kernel,
        out_shape=jax.ShapeDtypeStruct((out_dim, n_pad), jnp.float32),
        grid_spec=pltpu.PrefetchScalarGridSpec(
            num_scalar_prefetch=0,
            grid=(grid_n,),
            in_specs=[
                pl.BlockSpec((in_dim, tile_n), lambda i: (0, i)),    # x tile (streamed)
                pl.BlockSpec((hidden, in_dim), lambda i: (0, 0)),    # W1^T (resident)
                pl.BlockSpec((hidden, 1), lambda i: (0, 0)),         # b1
                pl.BlockSpec((out_dim, hidden), lambda i: (0, 0)),   # W2^T (resident)
                pl.BlockSpec((out_dim, 1), lambda i: (0, 0)),        # b2
            ],
            out_specs=pl.BlockSpec((out_dim, tile_n), lambda i: (0, i)),
        ),
        compiler_params=pltpu.CompilerParams(
            dimension_semantics=("parallel",),   # sharded across v7x's 2 TCs
        ),
        cost_estimate=cost,
    )(xt, w1t, b1t, w2t, b2t)

    # Back to the module's [N, out_dim] layout, dropping the pad columns.
    return out_t[:, :n].T.astype(x.dtype)


def _reference(x, w1, b1, w2, b2):
    # Mirrors the kernel's bf16 MXU casts (f32 accumulate) for a tight check.
    f32 = jnp.float32
    xb = x.astype(jnp.bfloat16).astype(f32)
    w1b = w1.astype(jnp.bfloat16).astype(f32)
    w2b = w2.astype(jnp.bfloat16).astype(f32)
    h = jnp.maximum(xb @ w1b + b1[None, :], 0.0)
    hb = h.astype(jnp.bfloat16).astype(f32)
    y = hb @ w2b + b2[None, :]
    return jnp.where(y > 0.0, y, jnp.exp(jnp.minimum(y, 0.0)) - 1.0)


if __name__ == "__main__":
    key = jax.random.PRNGKey(0)
    k_x, k_w1, k_b1, k_w2, k_b2 = jax.random.split(key, 5)

    # Small GNN-ish shapes: 1000 nodes (deliberately NOT a multiple of the tile,
    # exercising the padding path), hidden_size=64 features, MLP hidden=128.
    N, IN_DIM, OUT_DIM = 1000, 64, 64
    HIDDEN = 128

    x = jax.random.normal(k_x, (N, IN_DIM), dtype=jnp.float32)
    w1 = jax.random.normal(k_w1, (IN_DIM, HIDDEN), dtype=jnp.float32) / jnp.sqrt(IN_DIM)
    b1 = jax.random.normal(k_b1, (HIDDEN,), dtype=jnp.float32) * 0.01
    w2 = jax.random.normal(k_w2, (HIDDEN, OUT_DIM), dtype=jnp.float32) / jnp.sqrt(HIDDEN)
    b2 = jax.random.normal(k_b2, (OUT_DIM,), dtype=jnp.float32) * 0.01

    out = la_op(x, w1, b1, w2, b2)
    out = jax.block_until_ready(out)

    ref = _reference(x, w1, b1, w2, b2)
    assert out.shape == (N, OUT_DIM)
    max_err = float(jnp.max(jnp.abs(out - ref)))
    assert jnp.allclose(out, ref, atol=2e-2, rtol=2e-2), (
        f"mismatch vs reference (max abs err {max_err})")

    print("KERNEL_OK")
</pallas_src>

<mosaic_0001>
module attributes {stable_mosaic.version = 11 : i64} {
  func.func @_la_mlp_kernel(%arg0: i32, %arg1: memref<64x512xbf16, #tpu.memory_space<vmem>>, %arg2: memref<128x64xbf16, #tpu.memory_space<vmem>>, %arg3: memref<128x1xf32, #tpu.memory_space<vmem>>, %arg4: memref<64x128xbf16, #tpu.memory_space<vmem>>, %arg5: memref<64x1xf32, #tpu.memory_space<vmem>>, %arg6: memref<64x512xf32, #tpu.memory_space<vmem>>) attributes {dimension_semantics = [#tpu.dimension_semantics<parallel>], iteration_bounds = array<i64: 2>, scalar_prefetch = 0 : i64, scratch_operands = 0 : i64, tpu.core_type = #tpu.core_type<tc>, window_params = [{transform_indices = @transform_0, window_bounds = array<i64: 64, 512>}, {pipeline_mode = #tpu.pipeline_mode<synchronous>, transform_indices = @transform_1, window_bounds = array<i64: 128, 64>}, {pipeline_mode = #tpu.pipeline_mode<synchronous>, transform_indices = @transform_2, window_bounds = array<i64: 128, 1>}, {pipeline_mode = #tpu.pipeline_mode<synchronous>, transform_indices = @transform_3, window_bounds = array<i64: 64, 128>}, {pipeline_mode = #tpu.pipeline_mode<synchronous>, transform_indices = @transform_4, window_bounds = array<i64: 64, 1>}, {transform_indices = @transform_5, window_bounds = array<i64: 64, 512>}]} {
    %c0 = arith.constant 0 : index
    %c0_0 = arith.constant 0 : index
    %0 = vector.load %arg2[%c0, %c0_0] : memref<128x64xbf16, #tpu.memory_space<vmem>>, vector<128x64xbf16>
    %c0_1 = arith.constant 0 : index
    %c0_2 = arith.constant 0 : index
    %1 = vector.load %arg1[%c0_1, %c0_2] : memref<64x512xbf16, #tpu.memory_space<vmem>>, vector<64x512xbf16>
    %cst = arith.constant dense<0.000000e+00> : vector<128x512xf32>
    %2 = tpu.matmul %0, %1, %cst {dimension_numbers = #tpu.dot_dimension_numbers<[1], [0], [0], [1], [0, 0, 1, 1], [], []>} : vector<128x64xbf16>, vector<64x512xbf16>, vector<128x512xf32> -> vector<128x512xf32>
    %c0_3 = arith.constant 0 : index
    %c0_4 = arith.constant 0 : index
    %3 = vector.load %arg3[%c0_3, %c0_4] : memref<128x1xf32, #tpu.memory_space<vmem>>, vector<128x1xf32>
    %4 = vector.broadcast %3 : vector<128x1xf32> to vector<128x512xf32>
    %5 = arith.addf %2, %4 : vector<128x512xf32>
    %cst_5 = arith.constant 0.000000e+00 : f32
    %6 = vector.broadcast %cst_5 : f32 to vector<128x512xf32>
    %7 = arith.maximumf %5, %6 : vector<128x512xf32>
    %c0_6 = arith.constant 0 : index
    %c0_7 = arith.constant 0 : index
    %8 = vector.load %arg4[%c0_6, %c0_7] : memref<64x128xbf16, #tpu.memory_space<vmem>>, vector<64x128xbf16>
    %9 = arith.truncf %7 : vector<128x512xf32> to vector<128x512xbf16>
    %cst_8 = arith.constant dense<0.000000e+00> : vector<64x512xf32>
    %10 = tpu.matmul %8, %9, %cst_8 {dimension_numbers = #tpu.dot_dimension_numbers<[1], [0], [0], [1], [0, 0, 1, 1], [], []>} : vector<64x128xbf16>, vector<128x512xbf16>, vector<64x512xf32> -> vector<64x512xf32>
    %c0_9 = arith.constant 0 : index
    %c0_10 = arith.constant 0 : index
    %11 = vector.load %arg5[%c0_9, %c0_10] : memref<64x1xf32, #tpu.memory_space<vmem>>, vector<64x1xf32>
    %12 = vector.broadcast %11 : vector<64x1xf32> to vector<64x512xf32>
    %13 = arith.addf %10, %12 : vector<64x512xf32>
    %cst_11 = arith.constant 0.000000e+00 : f32
    %14 = vector.broadcast %cst_11 : f32 to vector<64x512xf32>
    %15 = arith.minimumf %13, %14 : vector<64x512xf32>
    %16 = math.exp %15 : vector<64x512xf32>
    %cst_12 = arith.constant 1.000000e+00 : f32
    %17 = vector.broadcast %cst_12 : f32 to vector<64x512xf32>
    %18 = arith.subf %16, %17 : vector<64x512xf32>
    %cst_13 = arith.constant 0.000000e+00 : f32
    %19 = vector.broadcast %cst_13 : f32 to vector<64x512xf32>
    %20 = arith.cmpf ogt, %13, %19 : vector<64x512xf32>
    %21 = arith.select %20, %13, %18 : vector<64x512xi1>, vector<64x512xf32>
    %c0_14 = arith.constant 0 : index
    %c0_15 = arith.constant 0 : index
    %22 = vector.load %arg6[%c0_14, %c0_15] : memref<64x512xf32, #tpu.memory_space<vmem>>, vector<64x512xf32>
    tpu.vector_store %arg6[%c0_14, %c0_15], %21 {strides = array<i32>} : memref<64x512xf32, #tpu.memory_space<vmem>>, vector<64x512xf32>,
    return
  }
  func.func @transform_0(%arg0: i32) -> (i32, i32) {
    %c0_i32 = arith.constant 0 : i32
    %c0_i32_0 = arith.constant 0 : i32
    return %c0_i32, %arg0 : i32, i32
  }
  func.func @transform_1(%arg0: i32) -> (i32, i32) {
    %c0_i32 = arith.constant 0 : i32
    %c0_i32_0 = arith.constant 0 : i32
    %c0_i32_1 = arith.constant 0 : i32
    return %c0_i32, %c0_i32_0 : i32, i32
  }
  func.func @transform_2(%arg0: i32) -> (i32, i32) {
    %c0_i32 = arith.constant 0 : i32
    %c0_i32_0 = arith.constant 0 : i32
    %c0_i32_1 = arith.constant 0 : i32
    return %c0_i32, %c0_i32_0 : i32, i32
  }
  func.func @transform_3(%arg0: i32) -> (i32, i32) {
    %c0_i32 = arith.constant 0 : i32
    %c0_i32_0 = arith.constant 0 : i32
    %c0_i32_1 = arith.constant 0 : i32
    return %c0_i32, %c0_i32_0 : i32, i32
  }
  func.func @transform_4(%arg0: i32) -> (i32, i32) {
    %c0_i32 = arith.constant 0 : i32
    %c0_i32_0 = arith.constant 0 : i32
    %c0_i32_1 = arith.constant 0 : i32
    return %c0_i32, %c0_i32_0 : i32, i32
  }
  func.func @transform_5(%arg0: i32) -> (i32, i32) {
    %c0_i32 = arith.constant 0 : i32
    %c0_i32_0 = arith.constant 0 : i32
    return %c0_i32, %arg0 : i32, i32
  }
}

</mosaic_0001>

<bundles_post_ra>
// kernel: la_op.1
= control target key start
LH: loop header
LB: loop body
LE: loop exit
PB: predicated region body
PF: predicated region fallthrough
CT: control target
= control target key end

     0   :  { %s1737_s18 = smov 0   ;;  %s1739_s19 = smov 0   ;;  %s2295_s0 = inlined_call_operand.vmem [shape: bf16[64,1024], index: 0, kind: input, shape index: {}]   ;;  %s2296_s1 = inlined_call_operand.vmem [shape: bf16[128,64], index: 1, kind: input, shape index: {}]   ;;  %s2297_s2 = inlined_call_operand.vmem [shape: f32[128,1], index: 2, kind: input, shape index: {}]   ;;  %s2298_s3 = inlined_call_operand.vmem [shape: bf16[64,128], index: 3, kind: input, shape index: {}]   ;;  %s2299_s4 = inlined_call_operand.vmem [shape: f32[64,1], index: 4, kind: input, shape index: {}]   ;;  %s2300_s5 = inlined_call_operand.vmem [shape: f32[64,1024], index: 5, kind: output, shape index: {}]  }
   0x1   :  { %s1741_s20 = smov 0  }
   0x2 LB: > { %s1462_s21 = sadd.s32 4294967295, %s1704_s20   ;;  %s1754_s22 = sadd.s32 1, %s1704_s20   ;;  %s1704_s20 = sphi %s1741_s20, %s2304_s20   ;;  %s1700_s19 = sphi %s1739_s19, %s2303_s19   ;;  %s1696_s18 = sphi %s1737_s18, %s2302_s18  }
   0x3   : > { %s19_s23 = ssub.s32 %s1704_s20, %s1754_s22  ;;  %s22_s24 = sadd.s32 1, %s1700_s19 }
   0x4   : > { %p20_p0 = scmp.eq.s32.totalorder %s19_s23, 0  ;;  %p29_p1 = scmp.ne.s32.totalorder %s1700_s19, %s1696_s18 }
   0x5   : > { %p30_p2 = scmp.eq.s32.totalorder %s1704_s20, 0  ;;  %p143_p3 = scmp.eq.s32.totalorder %s1462_s21, 1 }
   0x6   : > { %s1765_s25 = scalar_select %p20_p0, %s1700_s19, %s22_s24  }
   0x7   : > { %p31_p4 = por %p30_p2, %p29_p1  ;;  %p1767_p5 = por %p143_p3, %p29_p1 }
   0x8   : > { %p1465_p6 = scmp.ge.s32.totalorder %s1704_s20, 2 }
   0xa   : > { %177 = sbr.rel (%p1465_p6) target bundleno = 29 (0x1d), region = 32 }
  0x11   : > { %180 = sbr.rel (!%p31_p4) target bundleno = 29 (0x1d), region = 36  ;;  %s182_s27 = sand.u32 (%p31_p4), 1, %s1700_s19  }
  0x12   : > { %s1553_s28 = sshll.u32 (%p31_p4), %s1704_s20, 4  ;;  %s1466_s29 = sshll.u32 (%p31_p4), %s182_s27, 7 }
  0x13   : > { %s1777_s7 = scalar_lea.vmem (%p31_p4), %s2295_s0, %s1553_s28  ;;  %s184_s8 = scalar_lea.vmem (%p31_p4), [#allocation2], %s1466_s29 }
  0x14   : > { %v200_v0 = vld [vmem:[%s1777_s7] sm:$0xff] (%p31_p4)  ;;  %v202_v1 = vld [vmem:[%s1777_s7 + $0x8] sm:$0xff] (%p31_p4) }
  0x15   : > { %v204_v2 = vld [vmem:[%s1777_s7 + $0x20] sm:$0xff] (%p31_p4)  ;;  %201 = vst [vmem:[%s184_s8] sm:$0xff] (%p31_p4), %v200_v0  ;;  %203 = vst [vmem:[%s184_s8 + $0x8] sm:$0xff] (%p31_p4), %v202_v1  ;;  %v206_v3 = vld [vmem:[%s1777_s7 + $0x28] sm:$0xff] (%p31_p4) }
  0x16   : > { %205 = vst [vmem:[%s184_s8 + $0x10] sm:$0xff] (%p31_p4), %v204_v2  ;;  %v208_v4 = vld [vmem:[%s1777_s7 + $0x40] sm:$0xff] (%p31_p4)  ;;  %v210_v5 = vld [vmem:[%s1777_s7 + $0x48] sm:$0xff] (%p31_p4)  ;;  %207 = vst [vmem:[%s184_s8 + $0x18] sm:$0xff] (%p31_p4), %v206_v3 }
  0x17   : > { %209 = vst [vmem:[%s184_s8 + $0x20] sm:$0xff] (%p31_p4), %v208_v4  ;;  %211 = vst [vmem:[%s184_s8 + $0x28] sm:$0xff] (%p31_p4), %v210_v5  ;;  %v212_v6 = vld [vmem:[%s1777_s7 + $0x60] sm:$0xff] (%p31_p4)  ;;  %v214_v7 = vld [vmem:[%s1777_s7 + $0x68] sm:$0xff] (%p31_p4) }
  0x18   : > { %v216_v8 = vld [vmem:[%s1777_s7 + $0x80] sm:$0xff]  ;;  %213 = vst [vmem:[%s184_s8 + $0x30] sm:$0xff] %v212_v6  ;;  %215 = vst [vmem:[%s184_s8 + $0x38] sm:$0xff] %v214_v7  ;;  %v218_v9 = vld [vmem:[%s1777_s7 + $0x88] sm:$0xff] }
  0x19   : > { %217 = vst [vmem:[%s184_s8 + $0x40] sm:$0xff] %v216_v8  ;;  %v220_v10 = vld [vmem:[%s1777_s7 + $0xa0] sm:$0xff]  ;;  %v222_v11 = vld [vmem:[%s1777_s7 + $0xa8] sm:$0xff]  ;;  %219 = vst [vmem:[%s184_s8 + $0x48] sm:$0xff] %v218_v9 }
  0x1a   : > { %221 = vst [vmem:[%s184_s8 + $0x50] sm:$0xff] %v220_v10  ;;  %223 = vst [vmem:[%s184_s8 + $0x58] sm:$0xff] %v222_v11  ;;  %v224_v12 = vld [vmem:[%s1777_s7 + $0xc0] sm:$0xff]  ;;  %v226_v13 = vld [vmem:[%s1777_s7 + $0xc8] sm:$0xff] }
  0x1b   : > { %v228_v14 = vld [vmem:[%s1777_s7 + $0xe0] sm:$0xff]  ;;  %225 = vst [vmem:[%s184_s8 + $0x60] sm:$0xff] %v224_v12  ;;  %227 = vst [vmem:[%s184_s8 + $0x68] sm:$0xff] %v226_v13  ;;  %v230_v15 = vld [vmem:[%s1777_s7 + $0xe8] sm:$0xff] }
  0x1c   : > { %229 = vst [vmem:[%s184_s8 + $0x70] sm:$0xff] %v228_v14  ;;  %231 = vst [vmem:[%s184_s8 + $0x78] sm:$0xff] %v230_v15 }
  0x1d PF: > { %p1469_p7 = scmp.ge.s32.totalorder %s1704_s20, 1  ;;  %p236_p8 = scmp.lt.s32.totalorder %s1704_s20, 3 }
  0x1f   : > { %p237_p9 = pnand %p1469_p7, %p236_p8 }
  0x20   : > { %s243_s9 = sand.u32 (!%p237_p9), 1, %s1696_s18   ;;  %v1706_v16 = vmov (!%p237_p9), 0   ;;  %v304_v33 = vld [vmem:[%s2297_s2] sm:$0xff] (!%p237_p9)  ;;  %v305_v35 = vld [vmem:[%s2297_s2 + $0x8] sm:$0xff] (!%p237_p9)  ;;  %v306_v36 = vld [vmem:[%s2297_s2 + $0x10] sm:$0xff] (!%p237_p9)  ;;  %vm520_vm0 = vcmask (!%p237_p9), 523264  }
  0x21   : > { %240 = sbr.rel (%p237_p9) target bundleno = 620 (0x26c), region = 59  ;;  %s1470_s10 = sshll.u32 (!%p237_p9), %s243_s9, 7  ;;  %577 = vmatprep.mubr.bf16.mxu0 (!%p237_p9), %v1706_v16  ;;  %690 = vmatprep.mubr.bf16.mxu1 (!%p237_p9), %v1706_v16  ;;  %v1606_v34 = vld [vmem:[%s2296_s1] sm:$0xff] (!%p237_p9)   ;;  %v307_v37 = vld [vmem:[%s2297_s2 + $0x18] sm:$0xff] (!%p237_p9)  ;;  %v309_v39 = vld [vmem:[%s2297_s2 + $0x28] sm:$0xff] (!%p237_p9) }
  0x22   : > { %1580 = vset.pattern.permute.xlu0 (!%p237_p9), %v1706_v16  ;;  %1581 = vset.pattern.permute.xlu1 (!%p237_p9), %v1706_v16  ;;  %s245_s11 = scalar_lea.vmem (!%p237_p9), [#allocation2], %s1470_s10  ;;  %v308_v38 = vld [vmem:[%s2297_s2 + $0x20] sm:$0xff] (!%p237_p9)  ;;  %v1607_v40 = vld [vmem:[%s2296_s1 + $0x8] sm:$0xff] (!%p237_p9)   ;;  %v310_v41 = vld [vmem:[%s2297_s2 + $0x30] sm:$0xff] (!%p237_p9)  ;;  %s1992_s16 = sshll.u32 (!%p237_p9), %s243_s9, 8 }
  0x23   : > { %v1582_v17 = vld [vmem:[%s245_s11 + $0x4] ss:$16 sps:$4 sm:$0xff] (!%p237_p9)   ;;  %v1584_v18 = vld [vmem:[%s245_s11 + $0xc] ss:$16 sps:$4 sm:$0xff] (!%p237_p9)   ;;  %v1586_v19 = vld [vmem:[%s245_s11] ss:$16 sps:$4 sm:$0xff] (!%p237_p9)   ;;  %322 = vperm.xlu0 (!%p237_p9), %1580, %v304_v33   ;;  %332 = vperm.xlu1 (!%p237_p9), %1581, %v306_v36  }
  0x24   : > { %545 = vmatprep.subr.bf16.mxu0 (!%p237_p9), %v1582_v17  ;;  %v1587_v20 = vld [vmem:[%s245_s11 + $0x8] ss:$16 sps:$4 sm:$0xff] (!%p237_p9)   ;;  %658 = vmatprep.subr.bf16.mxu1 (!%p237_p9), %v1584_v18  ;;  %v1588_v21 = vld [vmem:[%s245_s11 + $0x24] ss:$16 sps:$4 sm:$0xff] (!%p237_p9)   ;;  %v1590_v22 = vld [vmem:[%s245_s11 + $0x2c] ss:$16 sps:$4 sm:$0xff] (!%p237_p9)  }
  0x25   : > { %546 = vmatpush1.bf16.msra.mxu0 (!%p237_p9), %v1586_v19  ;;  %659 = vmatpush1.bf16.msra.mxu1 (!%p237_p9), %v1587_v20  ;;  %v1592_v23 = vld [vmem:[%s245_s11 + $0x20] ss:$16 sps:$4 sm:$0xff] (!%p237_p9)   ;;  %v1593_v24 = vld [vmem:[%s245_s11 + $0x28] ss:$16 sps:$4 sm:$0xff] (!%p237_p9)   ;;  %v1594_v25 = vld [vmem:[%s245_s11 + $0x44] ss:$16 sps:$4 sm:$0xff] (!%p237_p9)  }
  0x26   : > { %547 = vmatprep.subr.bf16.mxu0 (!%p237_p9), %v1588_v21  ;;  %660 = vmatprep.subr.bf16.mxu1 (!%p237_p9), %v1590_v22  ;;  %v1596_v26 = vld [vmem:[%s245_s11 + $0x4c] ss:$16 sps:$4 sm:$0xff] (!%p237_p9)   ;;  %v1598_v27 = vld [vmem:[%s245_s11 + $0x40] ss:$16 sps:$4 sm:$0xff] (!%p237_p9)   ;;  %v1599_v28 = vld [vmem:[%s245_s11 + $0x48] ss:$16 sps:$4 sm:$0xff] (!%p237_p9)  }
  0x27   : > { %v1600_v29 = vld [vmem:[%s245_s11 + $0x64] ss:$16 sps:$4 sm:$0xff] (!%p237_p9)   ;;  %v1602_v30 = vld [vmem:[%s245_s11 + $0x6c] ss:$16 sps:$4 sm:$0xff] (!%p237_p9)   ;;  %v1604_v31 = vld [vmem:[%s245_s11 + $0x60] ss:$16 sps:$4 sm:$0xff] (!%p237_p9)   ;;  %327 = vperm.xlu0 (!%p237_p9), %1580, %v305_v35   ;;  %337 = vperm.xlu1 (!%p237_p9), %1581, %v307_v37  }
  0x28   : > { %v1605_v32 = vld [vmem:[%s245_s11 + $0x68] ss:$16 sps:$4 sm:$0xff]   ;;  %v312_v43 = vld [vmem:[%s2297_s2 + $0x40] sm:$0xff]  ;;  %v1608_v45 = vld [vmem:[%s2296_s1 + $0x10] sm:$0xff]   ;;  %s2023_s18 = scalar_lea.vmem [#allocation3], %s1992_s16  ;;  %s1554_s9 = sshll.u32 (%p1767_p5), %s1462_s21, 5 }
  0x29   : > { %548 = vmatpush1.bf16.msra.mxu0 %v1592_v23  ;;  %661 = vmatpush1.bf16.msra.mxu1 %v1593_v24  ;;  %v311_v42 = vld [vmem:[%s2297_s2 + $0x38] sm:$0xff]  ;;  %v313_v44 = vld [vmem:[%s2297_s2 + $0x48] sm:$0xff]  ;;  %v314_v46 = vld [vmem:[%s2297_s2 + $0x50] sm:$0xff]  ;;  %s2222_s26 = scalar_lea.vmem (%p1767_p5), %s2300_s5, %s1554_s9 }
  0x2a   : > { %549 = vmatprep.subr.bf16.mxu0 %v1594_v25  ;;  %662 = vmatprep.subr.bf16.mxu1 %v1596_v26  ;;  %v315_v47 = vld [vmem:[%s2297_s2 + $0x58] sm:$0xff]  ;;  %v316_v48 = vld [vmem:[%s2297_s2 + $0x60] sm:$0xff]  ;;  %v317_v49 = vld [vmem:[%s2297_s2 + $0x68] sm:$0xff] }
  0x2b   : > { %342 = vperm.xlu0 %1580, %v308_v38   ;;  %347 = vperm.xlu1 %1581, %v309_v39   ;;  %v1609_v50 = vld [vmem:[%s2296_s1 + $0x18] sm:$0xff]   ;;  %v318_v51 = vld [vmem:[%s2297_s2 + $0x70] sm:$0xff]  ;;  %v875_v53 = vld [vmem:[%s2299_s4] sm:$0xff] }
  0x2c   : > { %v319_v52 = vld [vmem:[%s2297_s2 + $0x78] sm:$0xff]  ;;  %v876_v54 = vld [vmem:[%s2299_s4 + $0x8] sm:$0xff]  ;;  %v1610_v55 = vld [vmem:[%s2296_s1 + $0x20] sm:$0xff]  }
  0x2d   : > { %550 = vmatpush1.bf16.msra.mxu0 %v1598_v27  ;;  %663 = vmatpush1.bf16.msra.mxu1 %v1599_v28  ;;  %v877_v56 = vld [vmem:[%s2299_s4 + $0x10] sm:$0xff]  ;;  %v878_v57 = vld [vmem:[%s2299_s4 + $0x18] sm:$0xff]  ;;  %v879_v58 = vld [vmem:[%s2299_s4 + $0x20] sm:$0xff] }
  0x2e   : > { %551 = vmatprep.subr.bf16.mxu0 %v1600_v29  ;;  %664 = vmatprep.subr.bf16.mxu1 %v1602_v30  ;;  %v880_v59 = vld [vmem:[%s2299_s4 + $0x28] sm:$0xff]  ;;  %v881_v61 = vld [vmem:[%s2299_s4 + $0x30] sm:$0xff]  ;;  %v882_v62 = vld [vmem:[%s2299_s4 + $0x38] sm:$0xff] }
  0x2f   : > { %352 = vperm.xlu0 %1580, %v310_v41   ;;  %357 = vperm.xlu1 %1581, %v311_v42   ;;  %v1611_v60 = vld [vmem:[%s2296_s1 + $0x28] sm:$0xff]   ;;  %v1612_v63 = vld [vmem:[%s2296_s1 + $0x30] sm:$0xff]   ;;  %v1613_v0 = vld [vmem:[%s2296_s1 + $0x38] sm:$0xff]  }
  0x31   : > { %552 = vmatpush1.bf16.msra.mxu0 %v1604_v31  ;;  %665 = vmatpush1.bf16.msra.mxu1 %v1605_v32 }
  0x33   : > { %362 = vperm.xlu0 %1580, %v312_v43   ;;  %367 = vperm.xlu1 %1581, %v313_v44  }
  0x34   : > { %1496 = vmatmul.mubr.msk.bf16.vlgmr.msra.gmra.mrb[0].mxu0 %vm520_vm0, %v1606_v34  ;;  %1504 = vmatmul.mubr.msk.bf16.vlgmr.msra.gmra.mrb[0].mxu1 %vm520_vm0, %v1606_v34 }
  0x35   : > { %587 = vmatprep.mubr.bf16.mxu0 %v1706_v16  ;;  %700 = vmatprep.mubr.bf16.mxu1 %v1706_v16 }
  0x37   : > { %372 = vperm.xlu0 %1580, %v314_v46   ;;  %377 = vperm.xlu1 %1581, %v315_v47  }
  0x3b   : > { %382 = vperm.xlu0 %1580, %v316_v48   ;;  %387 = vperm.xlu1 %1581, %v317_v49  }
  0x3c   : > { %1497 = vmatmul.mubr.msk.bf16.gmra.mrb[4].mxu0 %vm520_vm0, %v1607_v40  ;;  %1505 = vmatmul.mubr.msk.bf16.gmra.mrb[4].mxu1 %vm520_vm0, %v1607_v40 }
  0x3d   : > { %597 = vmatprep.mubr.bf16.mxu0 %v1706_v16  ;;  %710 = vmatprep.mubr.bf16.mxu1 %v1706_v16 }
  0x3f   : > { %392 = vperm.xlu0 %1580, %v318_v51   ;;  %397 = vperm.xlu1 %1581, %v319_v52  }
  0x43   : > { %885 = vperm.xlu0 %1580, %v875_v53   ;;  %890 = vperm.xlu1 %1581, %v876_v54  }
  0x44   : > { %1498 = vmatmul.mubr.msk.bf16.gmra.mrb[8].mxu0 %vm520_vm0, %v1608_v45  ;;  %1506 = vmatmul.mubr.msk.bf16.gmra.mrb[8].mxu1 %vm520_vm0, %v1608_v45 }
  0x45   : > { %607 = vmatprep.mubr.bf16.mxu0 %v1706_v16  ;;  %720 = vmatprep.mubr.bf16.mxu1 %v1706_v16 }
  0x47   : > { %895 = vperm.xlu0 %1580, %v877_v56   ;;  %900 = vperm.xlu1 %1581, %v878_v57  }
  0x4b   : > { %905 = vperm.xlu0 %1580, %v879_v58   ;;  %910 = vperm.xlu1 %1581, %v880_v59  }
  0x4c   : > { %1499 = vmatmul.mubr.msk.bf16.gmra.mrb[12].mxu0 %vm520_vm0, %v1609_v50  ;;  %1507 = vmatmul.mubr.msk.bf16.gmra.mrb[12].mxu1 %vm520_vm0, %v1609_v50 }
  0x4d   : > { %617 = vmatprep.mubr.bf16.mxu0 %v1706_v16  ;;  %730 = vmatprep.mubr.bf16.mxu1 %v1706_v16 }
  0x4f   : > { %915 = vperm.xlu0 %1580, %v881_v61   ;;  %920 = vperm.xlu1 %1581, %v882_v62  }
  0x54   : > { %1500 = vmatmul.mubr.msk.bf16.gmra.mrb[16].mxu0 %vm520_vm0, %v1610_v55  ;;  %1508 = vmatmul.mubr.msk.bf16.gmra.mrb[16].mxu1 %vm520_vm0, %v1610_v55 }
  0x55   : > { %627 = vmatprep.mubr.bf16.mxu0 %v1706_v16  ;;  %740 = vmatprep.mubr.bf16.mxu1 %v1706_v16 }
  0x5c   : > { %1501 = vmatmul.mubr.msk.bf16.gmra.mrb[20].mxu0 %vm520_vm0, %v1611_v60  ;;  %1509 = vmatmul.mubr.msk.bf16.gmra.mrb[20].mxu1 %vm520_vm0, %v1611_v60 }
  0x5d   : > { %637 = vmatprep.mubr.bf16.mxu0 %v1706_v16  ;;  %750 = vmatprep.mubr.bf16.mxu1 %v1706_v16 }
  0x64   : > { %1502 = vmatmul.mubr.msk.bf16.gmra.mrb[24].mxu0 %vm520_vm0, %v1612_v63  ;;  %1510 = vmatmul.mubr.msk.bf16.gmra.mrb[24].mxu1 %vm520_vm0, %v1612_v63 }
  0x65   : > { %647 = vmatprep.mubr.bf16.mxu0 %v1706_v16  ;;  %760 = vmatprep.mubr.bf16.mxu1 %v1706_v16 }
  0x6c   : > { %1503 = vmatmul.mubr.msk.bf16.gmra.mrb[28].mxu0 %vm520_vm0, %v1613_v0  ;;  %1511 = vmatmul.mubr.msk.bf16.gmra.mrb[28].mxu1 %vm520_vm0, %v1613_v0 }
  0x6d   : > { %979 = vmatprep.mubr.bf16.mxu0 %v1706_v16  ;;  %1052 = vmatprep.mubr.bf16.mxu1 %v1706_v16 }
  0xa2   : > { %v323_v1 = vpop.permute.xlu0 %322  ;;  %v333_v3 = vpop.permute.xlu1 %332 }
  0xa6   : > { %v328_v2 = vpop.permute.xlu0 %327  ;;  %v338_v29 = vpop.permute.xlu1 %337 }
  0xaa   : > { %v343_v58 = vpop.permute.xlu0 %342  ;;  %v348_v59 = vpop.permute.xlu1 %347 }
 0x107   : > { %v579_v4 = vpop.f32.mrb[0].mxu0  ;;  %v692_v5 = vpop.f32.mrb[0].mxu1 }
 0x108   : > { %v580_v6 = vadd.f32 %v579_v4, %v323_v1  ;;  %v693_v7 = vadd.f32 %v692_v5, %v323_v1  ;;  %v581_v8 = vpop.f32.mrb[1].mxu0  ;;  %v694_v9 = vpop.f32.mrb[1].mxu1 }
 0x109   : > { %v582_v10 = vadd.f32 %v581_v8, %v323_v1  ;;  %v695_v11 = vadd.f32 %v694_v9, %v323_v1  ;;  %v583_v12 = vpop.f32.mrb[2].mxu0  ;;  %v696_v13 = vpop.f32.mrb[2].mxu1 }
 0x10a   : > { %v584_v14 = vadd.f32 %v583_v12, %v328_v2  ;;  %v697_v15 = vadd.f32 %v696_v13, %v328_v2  ;;  %v585_v17 = vpop.f32.mrb[3].mxu0  ;;  %v698_v18 = vpop.f32.mrb[3].mxu1  ;;  %v771_v21 = vmax.f32 %v580_v6, 0.0  ;;  %v773_v22 = vmax.f32 %v693_v7, 0.0 }
 0x10b   : > { %v586_v19 = vadd.f32 %v585_v17, %v328_v2  ;;  %v699_v20 = vadd.f32 %v698_v18, %v328_v2  ;;  %v772_v25 = vmax.f32 %v582_v10, 0.0  ;;  %v774_v26 = vmax.f32 %v695_v11, 0.0 }
 0x10c   : > { %v775_v23 = vmax.f32 %v584_v14, 0.0  ;;  %v777_v24 = vmax.f32 %v697_v15, 0.0 }
 0x10d   : > { %v776_v27 = vmax.f32 %v586_v19, 0.0  ;;  %v778_v28 = vmax.f32 %v699_v20, 0.0 }
 0x10e   : > { %v843_v30 = vpack.c.bf16 %v775_v23, %v771_v21  ;;  %v845_v31 = vpack.c.bf16 %v777_v24, %v773_v22 }
 0x10f   : > { %v844_v32 = vpack.c.bf16 %v776_v27, %v772_v25  ;;  %v846_v33 = vpack.c.bf16 %v778_v28, %v774_v26  ;;  %v589_v34 = vpop.f32.mrb[4].mxu0  ;;  %v702_v35 = vpop.f32.mrb[4].mxu1 }
 0x110   : > { %v590_v36 = vadd.f32 %v589_v34, %v333_v3  ;;  %v703_v37 = vadd.f32 %v702_v35, %v333_v3  ;;  %v591_v38 = vpop.f32.mrb[5].mxu0  ;;  %v704_v39 = vpop.f32.mrb[5].mxu1 }
 0x111   : > { %v592_v40 = vadd.f32 %v591_v38, %v333_v3  ;;  %v705_v41 = vadd.f32 %v704_v39, %v333_v3  ;;  %v593_v42 = vpop.f32.mrb[6].mxu0  ;;  %v706_v43 = vpop.f32.mrb[6].mxu1  ;;  %947 = vmatprep.subr.bf16.mxu0 %v844_v32  ;;  %1020 = vmatprep.subr.bf16.mxu1 %v846_v33 }
 0x112   : > { %v594_v44 = vadd.f32 %v593_v42, %v338_v29  ;;  %v707_v45 = vadd.f32 %v706_v43, %v338_v29  ;;  %v595_v46 = vpop.f32.mrb[7].mxu0  ;;  %v708_v47 = vpop.f32.mrb[7].mxu1  ;;  %948 = vmatpush1.bf16.msra.mxu0 %v843_v30  ;;  %1021 = vmatpush1.bf16.msra.mxu1 %v845_v31  ;;  %v779_v50 = vmax.f32 %v590_v36, 0.0  ;;  %v781_v51 = vmax.f32 %v703_v37, 0.0 }
 0x113   : > { %v596_v48 = vadd.f32 %v595_v46, %v338_v29  ;;  %v709_v49 = vadd.f32 %v708_v47, %v338_v29  ;;  %v780_v54 = vmax.f32 %v592_v40, 0.0  ;;  %v782_v55 = vmax.f32 %v705_v41, 0.0  ;;  %v353_v25 = vpop.permute.xlu0 %352  ;;  %v358_v26 = vpop.permute.xlu1 %357 }
 0x114   : > { %v783_v52 = vmax.f32 %v594_v44, 0.0  ;;  %v785_v53 = vmax.f32 %v707_v45, 0.0 }
 0x115   : > { %v784_v56 = vmax.f32 %v596_v48, 0.0  ;;  %v786_v57 = vmax.f32 %v709_v49, 0.0 }
 0x116   : > { %v847_v60 = vpack.c.bf16 %v783_v52, %v779_v50  ;;  %v849_v61 = vpack.c.bf16 %v785_v53, %v781_v51 }
 0x117   : > { %v848_v62 = vpack.c.bf16 %v784_v56, %v780_v54  ;;  %v850_v63 = vpack.c.bf16 %v786_v57, %v782_v55  ;;  %v599_v0 = vpop.f32.mrb[8].mxu0  ;;  %v712_v1 = vpop.f32.mrb[8].mxu1 }
 0x118   : > { %v600_v2 = vadd.f32 %v599_v0, %v343_v58  ;;  %v713_v3 = vadd.f32 %v712_v1, %v343_v58  ;;  %v601_v4 = vpop.f32.mrb[9].mxu0  ;;  %v714_v5 = vpop.f32.mrb[9].mxu1 }
 0x119   : > { %v602_v6 = vadd.f32 %v601_v4, %v343_v58  ;;  %v715_v7 = vadd.f32 %v714_v5, %v343_v58  ;;  %v603_v8 = vpop.f32.mrb[10].mxu0  ;;  %v716_v9 = vpop.f32.mrb[10].mxu1  ;;  %949 = vmatprep.subr.bf16.mxu0 %v848_v62  ;;  %1022 = vmatprep.subr.bf16.mxu1 %v850_v63 }
 0x11a   : > { %v604_v10 = vadd.f32 %v603_v8, %v348_v59  ;;  %v717_v11 = vadd.f32 %v716_v9, %v348_v59  ;;  %v605_v12 = vpop.f32.mrb[11].mxu0  ;;  %v718_v13 = vpop.f32.mrb[11].mxu1  ;;  %950 = vmatpush1.bf16.msra.mxu0 %v847_v60  ;;  %1023 = vmatpush1.bf16.msra.mxu1 %v849_v61  ;;  %v787_v17 = vmax.f32 %v600_v2, 0.0  ;;  %v789_v18 = vmax.f32 %v713_v3, 0.0 }
 0x11b   : > { %v606_v14 = vadd.f32 %v605_v12, %v348_v59  ;;  %v719_v15 = vadd.f32 %v718_v13, %v348_v59  ;;  %v788_v21 = vmax.f32 %v602_v6, 0.0  ;;  %v790_v22 = vmax.f32 %v715_v7, 0.0  ;;  %v363_v55 = vpop.permute.xlu0 %362  ;;  %v368_v56 = vpop.permute.xlu1 %367 }
 0x11c   : > { %v791_v19 = vmax.f32 %v604_v10, 0.0  ;;  %v793_v20 = vmax.f32 %v717_v11, 0.0 }
 0x11d   : > { %v792_v23 = vmax.f32 %v606_v14, 0.0  ;;  %v794_v24 = vmax.f32 %v719_v15, 0.0 }
 0x11e   : > { %v851_v27 = vpack.c.bf16 %v791_v19, %v787_v17  ;;  %v853_v28 = vpack.c.bf16 %v793_v20, %v789_v18 }
 0x11f   : > { %v852_v29 = vpack.c.bf16 %v792_v23, %v788_v21  ;;  %v854_v30 = vpack.c.bf16 %v794_v24, %v790_v22  ;;  %v609_v31 = vpop.f32.mrb[12].mxu0  ;;  %v722_v32 = vpop.f32.mrb[12].mxu1 }
 0x120   : > { %v610_v33 = vadd.f32 %v609_v31, %v353_v25  ;;  %v723_v34 = vadd.f32 %v722_v32, %v353_v25  ;;  %v611_v35 = vpop.f32.mrb[13].mxu0  ;;  %v724_v36 = vpop.f32.mrb[13].mxu1 }
 0x121   : > { %v612_v37 = vadd.f32 %v611_v35, %v353_v25  ;;  %v725_v38 = vadd.f32 %v724_v36, %v353_v25  ;;  %v613_v39 = vpop.f32.mrb[14].mxu0  ;;  %v726_v40 = vpop.f32.mrb[14].mxu1  ;;  %951 = vmatprep.subr.bf16.mxu0 %v852_v29  ;;  %1024 = vmatprep.subr.bf16.mxu1 %v854_v30 }
 0x122   : > { %v614_v41 = vadd.f32 %v613_v39, %v358_v26  ;;  %v727_v42 = vadd.f32 %v726_v40, %v358_v26  ;;  %v615_v43 = vpop.f32.mrb[15].mxu0  ;;  %v728_v44 = vpop.f32.mrb[15].mxu1  ;;  %952 = vmatpush1.bf16.msra.mxu0 %v851_v27  ;;  %1025 = vmatpush1.bf16.msra.mxu1 %v853_v28  ;;  %v795_v47 = vmax.f32 %v610_v33, 0.0  ;;  %v797_v48 = vmax.f32 %v723_v34, 0.0 }
 0x123   : > { %v616_v45 = vadd.f32 %v615_v43, %v358_v26  ;;  %v729_v46 = vadd.f32 %v728_v44, %v358_v26  ;;  %v796_v51 = vmax.f32 %v612_v37, 0.0  ;;  %v798_v52 = vmax.f32 %v725_v38, 0.0  ;;  %v373_v22 = vpop.permute.xlu0 %372  ;;  %v378_v23 = vpop.permute.xlu1 %377 }
 0x124   : > { %v799_v49 = vmax.f32 %v614_v41, 0.0  ;;  %v801_v50 = vmax.f32 %v727_v42, 0.0 }
 0x125   : > { %v800_v53 = vmax.f32 %v616_v45, 0.0  ;;  %v802_v54 = vmax.f32 %v729_v46, 0.0 }
 0x126   : > { %v855_v57 = vpack.c.bf16 %v799_v49, %v795_v47  ;;  %v857_v58 = vpack.c.bf16 %v801_v50, %v797_v48 }
 0x127   : > { %v856_v59 = vpack.c.bf16 %v800_v53, %v796_v51  ;;  %v858_v60 = vpack.c.bf16 %v802_v54, %v798_v52  ;;  %v619_v61 = vpop.f32.mrb[16].mxu0  ;;  %v732_v62 = vpop.f32.mrb[16].mxu1 }
 0x128   : > { %v620_v63 = vadd.f32 %v619_v61, %v363_v55  ;;  %v733_v0 = vadd.f32 %v732_v62, %v363_v55  ;;  %v621_v1 = vpop.f32.mrb[17].mxu0  ;;  %v734_v2 = vpop.f32.mrb[17].mxu1 }
 0x129   : > { %v622_v3 = vadd.f32 %v621_v1, %v363_v55  ;;  %v735_v4 = vadd.f32 %v734_v2, %v363_v55  ;;  %v623_v5 = vpop.f32.mrb[18].mxu0  ;;  %v736_v6 = vpop.f32.mrb[18].mxu1  ;;  %953 = vmatprep.subr.bf16.mxu0 %v856_v59  ;;  %1026 = vmatprep.subr.bf16.mxu1 %v858_v60 }
 0x12a   : > { %v624_v7 = vadd.f32 %v623_v5, %v368_v56  ;;  %v737_v8 = vadd.f32 %v736_v6, %v368_v56  ;;  %v625_v9 = vpop.f32.mrb[19].mxu0  ;;  %v738_v10 = vpop.f32.mrb[19].mxu1  ;;  %954 = vmatpush1.bf16.msra.mxu0 %v855_v57  ;;  %1027 = vmatpush1.bf16.msra.mxu1 %v857_v58  ;;  %v803_v13 = vmax.f32 %v620_v63, 0.0  ;;  %v805_v14 = vmax.f32 %v733_v0, 0.0 }
 0x12b   : > { %v626_v11 = vadd.f32 %v625_v9, %v368_v56  ;;  %v739_v12 = vadd.f32 %v738_v10, %v368_v56  ;;  %v804_v18 = vmax.f32 %v622_v3, 0.0  ;;  %v806_v19 = vmax.f32 %v735_v4, 0.0  ;;  %v383_v52 = vpop.permute.xlu0 %382  ;;  %v388_v53 = vpop.permute.xlu1 %387 }
 0x12c   : > { %v807_v15 = vmax.f32 %v624_v7, 0.0  ;;  %v809_v17 = vmax.f32 %v737_v8, 0.0 }
 0x12d   : > { %v808_v20 = vmax.f32 %v626_v11, 0.0  ;;  %v810_v21 = vmax.f32 %v739_v12, 0.0 }
 0x12e   : > { %v859_v24 = vpack.c.bf16 %v807_v15, %v803_v13  ;;  %v861_v25 = vpack.c.bf16 %v809_v17, %v805_v14 }
 0x12f   : > { %v860_v26 = vpack.c.bf16 %v808_v20, %v804_v18  ;;  %v862_v27 = vpack.c.bf16 %v810_v21, %v806_v19  ;;  %v629_v28 = vpop.f32.mrb[20].mxu0  ;;  %v742_v29 = vpop.f32.mrb[20].mxu1 }
 0x130   : > { %v630_v30 = vadd.f32 %v629_v28, %v373_v22  ;;  %v743_v31 = vadd.f32 %v742_v29, %v373_v22  ;;  %v631_v32 = vpop.f32.mrb[21].mxu0  ;;  %v744_v33 = vpop.f32.mrb[21].mxu1 }
 0x131   : > { %v632_v34 = vadd.f32 %v631_v32, %v373_v22  ;;  %v745_v35 = vadd.f32 %v744_v33, %v373_v22  ;;  %v633_v36 = vpop.f32.mrb[22].mxu0  ;;  %v746_v37 = vpop.f32.mrb[22].mxu1  ;;  %955 = vmatprep.subr.bf16.mxu0 %v860_v26  ;;  %1028 = vmatprep.subr.bf16.mxu1 %v862_v27 }
 0x132   : > { %v634_v38 = vadd.f32 %v633_v36, %v378_v23  ;;  %v747_v39 = vadd.f32 %v746_v37, %v378_v23  ;;  %v635_v40 = vpop.f32.mrb[23].mxu0  ;;  %v748_v41 = vpop.f32.mrb[23].mxu1  ;;  %956 = vmatpush1.bf16.msra.mxu0 %v859_v24  ;;  %1029 = vmatpush1.bf16.msra.mxu1 %v861_v25  ;;  %v811_v44 = vmax.f32 %v630_v30, 0.0  ;;  %v813_v45 = vmax.f32 %v743_v31, 0.0 }
 0x133   : > { %v636_v42 = vadd.f32 %v635_v40, %v378_v23  ;;  %v749_v43 = vadd.f32 %v748_v41, %v378_v23  ;;  %v812_v48 = vmax.f32 %v632_v34, 0.0  ;;  %v814_v49 = vmax.f32 %v745_v35, 0.0  ;;  %v393_v19 = vpop.permute.xlu0 %392  ;;  %v398_v20 = vpop.permute.xlu1 %397 }
 0x134   : > { %v815_v46 = vmax.f32 %v634_v38, 0.0  ;;  %v817_v47 = vmax.f32 %v747_v39, 0.0 }
 0x135   : > { %v816_v50 = vmax.f32 %v636_v42, 0.0  ;;  %v818_v51 = vmax.f32 %v749_v43, 0.0 }
 0x136   : > { %v863_v54 = vpack.c.bf16 %v815_v46, %v811_v44  ;;  %v865_v55 = vpack.c.bf16 %v817_v47, %v813_v45 }
 0x137   : > { %v864_v56 = vpack.c.bf16 %v816_v50, %v812_v48  ;;  %v866_v57 = vpack.c.bf16 %v818_v51, %v814_v49  ;;  %v639_v58 = vpop.f32.mrb[24].mxu0  ;;  %v752_v59 = vpop.f32.mrb[24].mxu1 }
 0x138   : > { %v640_v60 = vadd.f32 %v639_v58, %v383_v52  ;;  %v753_v61 = vadd.f32 %v752_v59, %v383_v52  ;;  %v641_v62 = vpop.f32.mrb[25].mxu0  ;;  %v754_v63 = vpop.f32.mrb[25].mxu1 }
 0x139   : > { %v642_v0 = vadd.f32 %v641_v62, %v383_v52  ;;  %v755_v1 = vadd.f32 %v754_v63, %v383_v52  ;;  %v643_v2 = vpop.f32.mrb[26].mxu0  ;;  %v756_v3 = vpop.f32.mrb[26].mxu1  ;;  %957 = vmatprep.subr.bf16.mxu0 %v864_v56  ;;  %1030 = vmatprep.subr.bf16.mxu1 %v866_v57  ;;  %v1617_v56 = vld [vmem:[%s2298_s3 + $0x18] sm:$0xff]  }
 0x13a   : > { %v644_v4 = vadd.f32 %v643_v2, %v388_v53  ;;  %v757_v5 = vadd.f32 %v756_v3, %v388_v53  ;;  %v645_v6 = vpop.f32.mrb[27].mxu0  ;;  %v758_v7 = vpop.f32.mrb[27].mxu1  ;;  %958 = vmatpush1.bf16.msra.mxu0 %v863_v54  ;;  %1031 = vmatpush1.bf16.msra.mxu1 %v865_v55  ;;  %v819_v10 = vmax.f32 %v640_v60, 0.0  ;;  %v821_v11 = vmax.f32 %v753_v61, 0.0  ;;  %v1615_v54 = vld [vmem:[%s2298_s3 + $0x8] sm:$0xff]   ;;  %v1616_v55 = vld [vmem:[%s2298_s3 + $0x10] sm:$0xff]  }
 0x13b   : > { %v646_v8 = vadd.f32 %v645_v6, %v388_v53  ;;  %v759_v9 = vadd.f32 %v758_v7, %v388_v53  ;;  %v820_v14 = vmax.f32 %v642_v0, 0.0  ;;  %v822_v15 = vmax.f32 %v755_v1, 0.0  ;;  %v1614_v53 = vld [vmem:[%s2298_s3] sm:$0xff]   ;;  %v886_v57 = vpop.permute.xlu0 %885  ;;  %v891_v7 = vpop.permute.xlu1 %890 }
 0x13c   : > { %v823_v12 = vmax.f32 %v644_v4, 0.0  ;;  %v825_v13 = vmax.f32 %v757_v5, 0.0 }
 0x13d   : > { %v824_v17 = vmax.f32 %v646_v8, 0.0  ;;  %v826_v18 = vmax.f32 %v759_v9, 0.0 }
 0x13e   : > { %v867_v21 = vpack.c.bf16 %v823_v12, %v819_v10  ;;  %v869_v22 = vpack.c.bf16 %v825_v13, %v821_v11 }
 0x13f   : > { %v868_v23 = vpack.c.bf16 %v824_v17, %v820_v14  ;;  %v870_v24 = vpack.c.bf16 %v826_v18, %v822_v15  ;;  %v649_v25 = vpop.f32.mrb[28].mxu0  ;;  %v762_v26 = vpop.f32.mrb[28].mxu1 }
 0x140   : > { %v650_v27 = vadd.f32 %v649_v25, %v393_v19  ;;  %v763_v28 = vadd.f32 %v762_v26, %v393_v19  ;;  %v651_v29 = vpop.f32.mrb[29].mxu0  ;;  %v764_v30 = vpop.f32.mrb[29].mxu1 }
 0x141   : > { %v652_v31 = vadd.f32 %v651_v29, %v393_v19  ;;  %v765_v32 = vadd.f32 %v764_v30, %v393_v19  ;;  %v653_v33 = vpop.f32.mrb[30].mxu0  ;;  %v766_v34 = vpop.f32.mrb[30].mxu1  ;;  %959 = vmatprep.subr.bf16.mxu0 %v868_v23  ;;  %1032 = vmatprep.subr.bf16.mxu1 %v870_v24 }
 0x142   : > { %v654_v35 = vadd.f32 %v653_v33, %v398_v20  ;;  %v767_v36 = vadd.f32 %v766_v34, %v398_v20  ;;  %v655_v37 = vpop.f32.mrb[31].mxu0  ;;  %v768_v38 = vpop.f32.mrb[31].mxu1  ;;  %960 = vmatpush1.bf16.msra.mxu0 %v867_v21  ;;  %1033 = vmatpush1.bf16.msra.mxu1 %v869_v22  ;;  %v827_v41 = vmax.f32 %v650_v27, 0.0  ;;  %v829_v42 = vmax.f32 %v763_v28, 0.0 }
 0x143   : > { %v656_v39 = vadd.f32 %v655_v37, %v398_v20  ;;  %v769_v40 = vadd.f32 %v768_v38, %v398_v20  ;;  %v828_v45 = vmax.f32 %v652_v31, 0.0  ;;  %v830_v46 = vmax.f32 %v765_v32, 0.0  ;;  %v896_v24 = vpop.permute.xlu0 %895 }
 0x144   : > { %v831_v43 = vmax.f32 %v654_v35, 0.0  ;;  %v833_v44 = vmax.f32 %v767_v36, 0.0 }
 0x145   : > { %v832_v47 = vmax.f32 %v656_v39, 0.0  ;;  %v834_v48 = vmax.f32 %v769_v40, 0.0 }
 0x146   : > { %v871_v49 = vpack.c.bf16 %v831_v43, %v827_v41  ;;  %v873_v50 = vpack.c.bf16 %v833_v44, %v829_v42  ;;  %v901_v43 = vpop.permute.xlu1 %900 }
 0x147   : > { %v872_v51 = vpack.c.bf16 %v832_v47, %v828_v45  ;;  %v874_v52 = vpack.c.bf16 %v834_v48, %v830_v46 }
 0x149   : > { %961 = vmatprep.subr.bf16.mxu0 %v872_v51  ;;  %1034 = vmatprep.subr.bf16.mxu1 %v874_v52 }
 0x14a   : > { %962 = vmatpush1.bf16.msra.mxu0 %v871_v49  ;;  %1035 = vmatpush1.bf16.msra.mxu1 %v873_v50 }
 0x14d   : > { %980 = vmatmul.mubr.bf16.vlgmr.msra.gmra.mrb[32].mxu0 %v1614_v53  ;;  %1053 = vmatmul.mubr.bf16.vlgmr.msra.gmra.mrb[32].mxu1 %v1614_v53 }
 0x14e   : > { %989 = vmatprep.mubr.bf16.mxu0 %v1706_v16  ;;  %1062 = vmatprep.mubr.bf16.mxu1 %v1706_v16 }
 0x155   : > { %990 = vmatmul.mubr.bf16.gmra.mrb[36].mxu0 %v1615_v54  ;;  %1063 = vmatmul.mubr.bf16.gmra.mrb[36].mxu1 %v1615_v54 }
 0x156   : > { %999 = vmatprep.mubr.bf16.mxu0 %v1706_v16  ;;  %1072 = vmatprep.mubr.bf16.mxu1 %v1706_v16 }
 0x15d   : > { %1000 = vmatmul.mubr.bf16.gmra.mrb[40].mxu0 %v1616_v55  ;;  %1073 = vmatmul.mubr.bf16.gmra.mrb[40].mxu1 %v1616_v55 }
 0x15e   : > { %1009 = vmatprep.mubr.bf16.mxu0 %v1706_v16  ;;  %1082 = vmatprep.mubr.bf16.mxu1 %v1706_v16 }
 0x165   : > { %1010 = vmatmul.mubr.bf16.gmra.mrb[44].mxu0 %v1617_v56  ;;  %1083 = vmatmul.mubr.bf16.gmra.mrb[44].mxu1 %v1617_v56 }
 0x220   : > { %v981_v58 = vpop.f32.mrb[32].mxu0  ;;  %v1054_v59 = vpop.f32.mrb[32].mxu1 }
 0x221   : > { %v1950_v60 = vadd.f32 %v981_v58, %v886_v57  ;;  %v1952_v61 = vadd.f32 %v1054_v59, %v886_v57  ;;  %v983_v62 = vpop.f32.mrb[33].mxu0  ;;  %v1056_v63 = vpop.f32.mrb[33].mxu1 }
 0x222   : > { %v1954_v0 = vadd.f32 %v983_v62, %v886_v57  ;;  %v1956_v1 = vadd.f32 %v1056_v63, %v886_v57  ;;  %v985_v16 = vpop.f32.mrb[34].mxu0  ;;  %v1058_v2 = vpop.f32.mrb[34].mxu1 }
 0x223   : > { %v1093_v3 = vmin.f32 %v1950_v60, 0.0  ;;  %v1095_v4 = vmin.f32 %v1952_v61, 0.0  ;;  %v987_v5 = vpop.f32.mrb[35].mxu0  ;;  %v1060_v6 = vpop.f32.mrb[35].mxu1  ;;  %v1962_v12 = vadd.f32 %v985_v16, %v891_v7  ;;  %v1964_v13 = vadd.f32 %v1058_v2, %v891_v7 }
 0x224   : > { %v1094_v8 = vmin.f32 %v1954_v0, 0.0  ;;  %v1096_v9 = vmin.f32 %v1956_v1, 0.0  ;;  %v1966_v17 = vadd.f32 %v987_v5, %v891_v7  ;;  %v1968_v18 = vadd.f32 %v1060_v6, %v891_v7 }
 0x225   : > { %v1125_v10 = vmul.f32 1.442695, %v1093_v3  ;;  %v1129_v11 = vmul.f32 1.442695, %v1095_v4  ;;  %v1097_v19 = vmin.f32 %v1962_v12, 0.0  ;;  %v1099_v20 = vmin.f32 %v1964_v13, 0.0 }
 0x226   : > { %v1127_v14 = vmul.f32 1.442695, %v1094_v8  ;;  %v1131_v15 = vmul.f32 1.442695, %v1096_v9  ;;  %v1098_v21 = vmin.f32 %v1966_v17, 0.0  ;;  %v1100_v27 = vmin.f32 %v1968_v18, 0.0 }
 0x227   : > { %1618 = vpow2.f32 %v1125_v10  ;;  %v1133_v25 = vmul.f32 1.442695, %v1097_v19  ;;  %v1137_v26 = vmul.f32 1.442695, %v1099_v20  ;;  %vm1221_vm1 = vcmp.gt.f32.partialorder %v1950_v60, 0.0 }
 0x228   : > { %1620 = vpow2.f32 %v1129_v11  ;;  %v991_v22 = vpop.f32.mrb[36].mxu0  ;;  %v1064_v23 = vpop.f32.mrb[36].mxu1  ;;  %v1135_v29 = vmul.f32 1.442695, %v1098_v21  ;;  %v1139_v33 = vmul.f32 1.442695, %v1100_v27 }
 0x229   : > { %1622 = vpow2.f32 %v1127_v14  ;;  %v993_v28 = vpop.f32.mrb[37].mxu0  ;;  %v1974_v30 = vadd.f32 %v991_v22, %v896_v24  ;;  %v1066_v31 = vpop.f32.mrb[37].mxu1  ;;  %v1977_v34 = vadd.f32 %v1064_v23, %v896_v24  ;;  %vm1223_vm2 = vcmp.gt.f32.partialorder %v1952_v61, 0.0 }
 0x22a   : > { %1624 = vpow2.f32 %v1131_v15  ;;  %v995_v32 = vpop.f32.mrb[38].mxu0  ;;  %v1979_v35 = vadd.f32 %v993_v28, %v896_v24  ;;  %v1068_v36 = vpop.f32.mrb[38].mxu1  ;;  %v1983_v39 = vadd.f32 %v1066_v31, %v896_v24  ;;  %vm1222_vm3 = vcmp.gt.f32.partialorder %v1954_v0, 0.0 }
 0x22b   : > { %1626 = vpow2.f32 %v1133_v25  ;;  %v997_v37 = vpop.f32.mrb[39].mxu0  ;;  %v1101_v38 = vmin.f32 %v1974_v30, 0.0  ;;  %v1070_v40 = vpop.f32.mrb[39].mxu1  ;;  %v1103_v41 = vmin.f32 %v1977_v34, 0.0  ;;  %vm1224_vm4 = vcmp.gt.f32.partialorder %v1956_v1, 0.0 }
 0x22c   : > { %1628 = vpow2.f32 %v1137_v26  ;;  %v1102_v42 = vmin.f32 %v1979_v35, 0.0  ;;  %v1104_v45 = vmin.f32 %v1983_v39, 0.0  ;;  %vm1225_vm5 = vcmp.gt.f32.partialorder %v1962_v12, 0.0  ;;  %v906_v26 = vpop.permute.xlu0 %905 }
 0x22d   : > { %1630 = vpow2.f32 %v1135_v29  ;;  %v1141_v44 = vmul.f32 1.442695, %v1101_v38  ;;  %v1145_v46 = vmul.f32 1.442695, %v1103_v41  ;;  %v1995_v48 = vadd.f32 %v995_v32, %v901_v43 }
 0x22e   : > { %1632 = vpow2.f32 %v1139_v33  ;;  %v1143_v47 = vmul.f32 1.442695, %v1102_v42  ;;  %v1147_v49 = vmul.f32 1.442695, %v1104_v45  ;;  %v1997_v50 = vadd.f32 %v1068_v36, %v901_v43 }
 0x22f   : > { %1634 = vpow2.f32 %v1141_v44  ;;  %v1999_v51 = vadd.f32 %v997_v37, %v901_v43  ;;  %vm1227_vm6 = vcmp.gt.f32.partialorder %v1964_v13, 0.0  ;;  %vm1226_vm7 = vcmp.gt.f32.partialorder %v1966_v17, 0.0 }
 0x230   : > { %v1001_v52 = vpop.f32.mrb[40].mxu0  ;;  %v1074_v53 = vpop.f32.mrb[40].mxu1  ;;  %1636 = vpow2.f32 %v1145_v46  ;;  %v1105_v55 = vmin.f32 %v1995_v48, 0.0  ;;  %v1107_v62 = vmin.f32 %v1997_v50, 0.0  ;;  %v2007_v63 = vadd.f32 %v1070_v40, %v901_v43 }
 0x231   : > { %v1619_v54 = vpop.eup %1618  ;;  %v1003_v56 = vpop.f32.mrb[41].mxu0  ;;  %1638 = vpow2.f32 %v1143_v47  ;;  %v1106_v6 = vmin.f32 %v1999_v51, 0.0  ;;  %vm1228_vm8 = vcmp.gt.f32.partialorder %v1968_v18, 0.0  ;;  %vm1229_vm9 = vcmp.gt.f32.partialorder %v1974_v30, 0.0 }
 0x232   : > { %v2004_v57 = vpop.f32.mrb[41].mxu1  ;;  %v1621_v58 = vpop.eup %1620  ;;  %v1516_v59 = vadd.f32 -1.0, %v1619_v54  ;;  %1640 = vpow2.f32 %v1147_v49  ;;  %v1149_v5 = vmul.f32 1.442695, %v1105_v55  ;;  %v1153_v14 = vmul.f32 1.442695, %v1107_v62 }
 0x233   : > { %v2009_v16 = vpop.f32.mrb[42].mxu0  ;;  %v2011_v2 = vpop.f32.mrb[42].mxu1  ;;  %v1518_v4 = vadd.f32 -1.0, %v1621_v58  ;;  %v1151_v21 = vmul.f32 1.442695, %v1106_v6  ;;  %v1108_v24 = vmin.f32 %v2007_v63, 0.0  ;;  %v2043_v32 = vadd.f32 %v1001_v52, %v906_v26 }
 0x234   : > { %v1623_v3 = vpop.eup %1622  ;;  %v2014_v7 = vpop.f32.mrb[43].mxu0  ;;  %v1253_v10 = vsel %vm1221_vm1, %v1950_v60, %v1516_v59  ;;  %1642 = vpow2.f32 %v1149_v5  ;;  %v2053_v38 = vadd.f32 %v1074_v53, %v906_v26  ;;  %v2055_v40 = vadd.f32 %v1003_v56, %v906_v26 }
 0x235   : > { %v2016_v8 = vpop.f32.mrb[43].mxu1  ;;  %v1625_v9 = vpop.eup %1624  ;;  %v1517_v11 = vadd.f32 -1.0, %v1623_v3  ;;  %1285 = vst [vmem:[%s2023_s18] sm:$0xff] %v1253_v10  ;;  %v1255_v19 = vsel %vm1223_vm2, %v1952_v61, %v1518_v4  ;;  %1644 = vpow2.f32 %v1153_v14  ;;  %v1155_v31 = vmul.f32 1.442695, %v1108_v24 }
 0x236   : > { %v1627_v15 = vpop.eup %1626  ;;  %v1519_v20 = vadd.f32 -1.0, %v1625_v9  ;;  %1287 = vst [vmem:[%s2023_s18 + $0x10] sm:$0xff] %v1255_v19  ;;  %1646 = vpow2.f32 %v1151_v21  ;;  %vm1231_vm10 = vcmp.gt.f32.partialorder %v1977_v34, 0.0  ;;  %vm1230_vm11 = vcmp.gt.f32.partialorder %v1979_v35, 0.0 }
 0x237   : > { %v1629_v60 = vpop.eup %1628  ;;  %v1254_v22 = vsel %vm1222_vm3, %v1954_v0, %v1517_v11  ;;  %v1520_v23 = vadd.f32 -1.0, %v1627_v15  ;;  %1648 = vpow2.f32 %v1155_v31  ;;  %vm1232_vm12 = vcmp.gt.f32.partialorder %v1983_v39, 0.0  ;;  %v911_v11 = vpop.permute.xlu1 %910 }
 0x238   : > { %v1631_v25 = vpop.eup %1630  ;;  %1286 = vst [vmem:[%s2023_s18 + $0x8] sm:$0xff] %v1254_v22  ;;  %v1256_v61 = vsel %vm1224_vm4, %v1956_v1, %v1519_v20  ;;  %v1522_v27 = vadd.f32 -1.0, %v1629_v60  ;;  %v2045_v33 = vpop.f32.mrb[44].mxu0  ;;  %v1110_v58 = vmin.f32 %v2055_v40, 0.0  ;;  %v2088_v4 = vadd.f32 %v2004_v57, %v906_v26 }
 0x239   : > { %v1633_v28 = vpop.eup %1632  ;;  %1288 = vst [vmem:[%s2023_s18 + $0x18] sm:$0xff] %v1256_v61  ;;  %v1257_v0 = vsel %vm1225_vm5, %v1962_v12, %v1520_v23  ;;  %v1521_v29 = vadd.f32 -1.0, %v1631_v25  ;;  %v2047_v36 = vpop.f32.mrb[44].mxu1  ;;  %vm1233_vm13 = vcmp.gt.f32.partialorder %v1995_v48, 0.0  ;;  %v2105_v19 = vadd.f32 %v2009_v16, %v911_v11 }
 0x23a   : > { %1289 = vst [vmem:[%s2023_s18 + $0x20] sm:$0xff] %v1257_v0  ;;  %v1259_v1 = vsel %vm1227_vm6, %v1964_v13, %v1522_v27  ;;  %v1523_v37 = vadd.f32 -1.0, %v1633_v28  ;;  %v2057_v12 = vpop.f32.mrb[45].mxu0  ;;  %v2059_v41 = vpop.f32.mrb[45].mxu1  ;;  %v1109_v13 = vmin.f32 %v2043_v32, 0.0  ;;  %v1112_v57 = vmin.f32 %v2088_v4, 0.0 }
 0x23b   : > { %v1635_v42 = vpop.eup %1634  ;;  %1291 = vst [vmem:[%s2023_s18 + $0x30] sm:$0xff] %v1259_v1  ;;  %v1258_v43 = vsel %vm1226_vm7, %v1966_v17, %v1521_v29  ;;  %v2067_v44 = vpop.f32.mrb[46].mxu0  ;;  %v1111_v17 = vmin.f32 %v2053_v38, 0.0  ;;  %v1159_v9 = vmul.f32 1.442695, %v1110_v58  ;;  %v2109_v60 = vadd.f32 %v2011_v2, %v911_v11 }
 0x23c   : > { %v2069_v45 = vpop.f32.mrb[46].mxu1  ;;  %v1637_v46 = vpop.eup %1636  ;;  %1290 = vst [vmem:[%s2023_s18 + $0x28] sm:$0xff] %v1258_v43  ;;  %v1260_v47 = vsel %vm1228_vm8, %v1968_v18, %v1523_v37  ;;  %v1524_v49 = vadd.f32 -1.0, %v1635_v42  ;;  %v1157_v56 = vmul.f32 1.442695, %v1109_v13  ;;  %v2112_v22 = vadd.f32 %v2014_v7, %v911_v11 }
 0x23d   : > { %v2077_v52 = vpop.f32.mrb[47].mxu0  ;;  %v2079_v53 = vpop.f32.mrb[47].mxu1  ;;  %1292 = vst [vmem:[%s2023_s18 + $0x38] sm:$0xff] %v1260_v47  ;;  %v1526_v55 = vadd.f32 -1.0, %v1637_v46  ;;  %v1161_v3 = vmul.f32 1.442695, %v1111_v17 }
 0x23e   : > { %v1639_v54 = vpop.eup %1638  ;;  %v1261_v59 = vsel %vm1229_vm9, %v1974_v30, %v1524_v49  ;;  %1650 = vpow2.f32 %v1157_v56  ;;  %v1163_v21 = vmul.f32 1.442695, %v1112_v57  ;;  %vm1235_vm14 = vcmp.gt.f32.partialorder %v1997_v50, 0.0  ;;  %v916_v26 = vpop.permute.xlu0 %915 }
 0x23f   : > { %v1641_v18 = vpop.eup %1640  ;;  %v1525_v62 = vadd.f32 -1.0, %v1639_v54  ;;  %1293 = vst [vmem:[%s2023_s18 + $0x40] sm:$0xff] %v1261_v59  ;;  %v1263_v5 = vsel %vm1231_vm10, %v1977_v34, %v1526_v55  ;;  %1652 = vpow2.f32 %v1161_v3  ;;  %v1113_v16 = vmin.f32 %v2105_v19, 0.0  ;;  %v921_v17 = vpop.permute.xlu1 %920 }
 0x240   : > { %v1527_v6 = vadd.f32 -1.0, %v1641_v18  ;;  %v1643_v10 = vpop.eup %1642  ;;  %1295 = vst [vmem:[%s2023_s18 + $0x50] sm:$0xff] %v1263_v5  ;;  %1654 = vpow2.f32 %v1159_v9  ;;  %vm1234_vm15 = vcmp.gt.f32.partialorder %v1999_v51, 0.0  ;;  %v1115_v2 = vmin.f32 %v2109_v60, 0.0 }
 0x241   : > { %v1262_v30 = vsel %vm1230_vm11, %v1979_v35, %v1525_v62  ;;  %v1645_v14 = vpop.eup %1644  ;;  %v1528_v15 = vadd.f32 -1.0, %v1643_v10  ;;  %1656 = vpow2.f32 %v1163_v21  ;;  %vm1236_vm0 = vcmp.gt.f32.partialorder %v2007_v63, 0.0 }
 0x242   : > { %1294 = vst [vmem:[%s2023_s18 + $0x48] sm:$0xff] %v1262_v30  ;;  %v1264_v34 = vsel %vm1232_vm12, %v1983_v39, %v1527_v6  ;;  %v1647_v20 = vpop.eup %1646  ;;  %v1530_v35 = vadd.f32 -1.0, %v1645_v14  ;;  %v1114_v61 = vmin.f32 %v2112_v22, 0.0  ;;  %v1169_v28 = vmul.f32 1.442695, %v1115_v2 }
 0x243   : > { %1296 = vst [vmem:[%s2023_s18 + $0x58] sm:$0xff] %v1264_v34  ;;  %v1265_v23 = vsel %vm1233_vm13, %v1995_v48, %v1528_v15  ;;  %v1529_v39 = vadd.f32 -1.0, %v1647_v20  ;;  %v1649_v25 = vpop.eup %1648  ;;  %v1165_v48 = vmul.f32 1.442695, %v1113_v16  ;;  %v2130_v0 = vadd.f32 %v2045_v33, %v916_v26 }
 0x244   : > { %1297 = vst [vmem:[%s2023_s18 + $0x60] sm:$0xff] %v1265_v23  ;;  %v1267_v24 = vsel %vm1235_vm14, %v1997_v50, %v1530_v35  ;;  %v1531_v27 = vadd.f32 -1.0, %v1649_v25  ;;  %v2127_v50 = vadd.f32 %v2016_v8, %v911_v11  ;;  %v1167_v29 = vmul.f32 1.442695, %v1114_v61 }
 0x245   : > { %1299 = vst [vmem:[%s2023_s18 + $0x70] sm:$0xff] %v1267_v24  ;;  %v1266_v7 = vsel %vm1234_vm15, %v1999_v51, %v1529_v39  ;;  %1658 = vpow2.f32 %v1165_v48  ;;  %v2133_v31 = vadd.f32 %v2047_v36, %v916_v26  ;;  %v2136_v51 = vadd.f32 %v2057_v12, %v916_v26 }
 0x246   : > { %1298 = vst [vmem:[%s2023_s18 + $0x68] sm:$0xff] %v1266_v7  ;;  %v1268_v1 = vsel %vm1236_vm0, %v2007_v63, %v1531_v27  ;;  %1660 = vpow2.f32 %v1169_v28  ;;  %v1116_v37 = vmin.f32 %v2127_v50, 0.0  ;;  %vm1237_vm1 = vcmp.gt.f32.partialorder %v2043_v32, 0.0 }
 0x247   : > { %1300 = vst [vmem:[%s2023_s18 + $0x78] sm:$0xff] %v1268_v1  ;;  %1662 = vpow2.f32 %v1167_v29  ;;  %v1117_v8 = vmin.f32 %v2130_v0, 0.0  ;;  %v1119_v33 = vmin.f32 %v2133_v31, 0.0  ;;  %vm1239_vm2 = vcmp.gt.f32.partialorder %v2053_v38, 0.0 }
 0x248   : > { %v1651_v42 = vpop.eup %1650  ;;  %v1171_v12 = vmul.f32 1.442695, %v1116_v37  ;;  %v1118_v63 = vmin.f32 %v2136_v51, 0.0  ;;  %vm1238_vm3 = vcmp.gt.f32.partialorder %v2055_v40, 0.0  ;;  %v2151_v18 = vadd.f32 %v2059_v41, %v916_v26 }
 0x249   : > { %v1653_v36 = vpop.eup %1652  ;;  %v1532_v43 = vadd.f32 -1.0, %v1651_v42  ;;  %v1173_v47 = vmul.f32 1.442695, %v1117_v8  ;;  %v1177_v49 = vmul.f32 1.442695, %v1119_v33  ;;  %v2154_v59 = vadd.f32 %v2067_v44, %v921_v17 }
 0x24a   : > { %v1655_v13 = vpop.eup %1654  ;;  %v1534_v46 = vadd.f32 -1.0, %v1653_v36  ;;  %1664 = vpow2.f32 %v1171_v12  ;;  %v1175_v56 = vmul.f32 1.442695, %v1118_v63  ;;  %v2162_v5 = vadd.f32 %v2077_v52, %v921_v17 }
 0x24b   : > { %v1269_v54 = vsel %vm1237_vm1, %v2043_v32, %v1532_v43  ;;  %v1533_v55 = vadd.f32 -1.0, %v1655_v13  ;;  %1666 = vpow2.f32 %v1173_v47  ;;  %v1657_v62 = vpop.eup %1656  ;;  %v2159_v32 = vadd.f32 %v2069_v45, %v921_v17  ;;  %v1339_v13 = vld [vmem:[%s2023_s18] sm:$0xff] (%p1767_p5)  ;;  %v1343_v47 = vld [vmem:[%s2023_s18 + $0x10] sm:$0xff] (%p1767_p5) }
 0x24c   : > { %1301 = vst [vmem:[%s2023_s18 + $0x80] sm:$0xff] %v1269_v54  ;;  %v1271_v58 = vsel %vm1239_vm2, %v2053_v38, %v1534_v46  ;;  %1668 = vpow2.f32 %v1177_v49  ;;  %v1535_v38 = vadd.f32 -1.0, %v1657_v62  ;;  %v1120_v41 = vmin.f32 %v2151_v18, 0.0  ;;  %v1341_v46 = vld [vmem:[%s2023_s18 + $0x8] sm:$0xff] (%p1767_p5)  ;;  %v1345_v49 = vld [vmem:[%s2023_s18 + $0x18] sm:$0xff] (%p1767_p5)  ;;  %1340 = vst [vmem:[%s2222_s26] sm:$0xff] (%p1767_p5), %v1339_v13 }
 0x24d   : > { %1303 = vst [vmem:[%s2023_s18 + $0x90] sm:$0xff] %v1271_v58  ;;  %v1270_v3 = vsel %vm1238_vm3, %v2055_v40, %v1533_v55  ;;  %1670 = vpow2.f32 %v1175_v56  ;;  %vm1240_vm4 = vcmp.gt.f32.partialorder %v2088_v4, 0.0  ;;  %v1121_v44 = vmin.f32 %v2154_v59, 0.0  ;;  %v1349_v54 = vld [vmem:[%s2023_s18 + $0x28] sm:$0xff] (%p1767_p5)  ;;  %1342 = vst [vmem:[%s2222_s26 + $0x8] sm:$0xff] (%p1767_p5), %v1341_v46  ;;  %v1351_v55 = vld [vmem:[%s2023_s18 + $0x30] sm:$0xff] (%p1767_p5) }
 0x24e   : > { %1302 = vst [vmem:[%s2023_s18 + $0x88] sm:$0xff] %v1270_v3  ;;  %v1123_v6 = vmin.f32 %v2159_v32, 0.0  ;;  %v1272_v9 = vsel %vm1240_vm4, %v2088_v4, %v1535_v38  ;;  %vm1241_vm5 = vcmp.gt.f32.partialorder %v2105_v19, 0.0  ;;  %v1179_v45 = vmul.f32 1.442695, %v1120_v41  ;;  %1344 = vst [vmem:[%s2222_s26 + $0x10] sm:$0xff] (%p1767_p5), %v1343_v47 }
 0x24f   : > { %v1659_v40 = vpop.eup %1658  ;;  %v1122_v52 = vmin.f32 %v2162_v5, 0.0  ;;  %1304 = vst [vmem:[%s2023_s18 + $0x98] sm:$0xff] %v1272_v9  ;;  %v1181_v30 = vmul.f32 1.442695, %v1121_v44  ;;  %v2174_v14 = vadd.f32 %v2079_v53, %v921_v17  ;;  %vm1243_vm6 = vcmp.gt.f32.partialorder %v2109_v60, 0.0  ;;  %v1347_v17 = vld [vmem:[%s2023_s18 + $0x20] sm:$0xff] (%p1767_p5) }
 0x250   : > { %v1661_v10 = vpop.eup %1660  ;;  %v1536_v11 = vadd.f32 -1.0, %v1659_v40  ;;  %v1185_v57 = vmul.f32 1.442695, %v1123_v6  ;;  %1672 = vpow2.f32 %v1179_v45  ;;  %vm1242_vm7 = vcmp.gt.f32.partialorder %v2112_v22, 0.0  ;;  %1346 = vst [vmem:[%s2222_s26 + $0x18] sm:$0xff] (%p1767_p5), %v1345_v49  ;;  %1348 = vst [vmem:[%s2222_s26 + $0x40] sm:$0xff] (%p1767_p5), %v1347_v17 }
 0x251   : > { %v1663_v34 = vpop.eup %1662  ;;  %v1538_v15 = vadd.f32 -1.0, %v1661_v10  ;;  %v1183_v4 = vmul.f32 1.442695, %v1122_v52  ;;  %1674 = vpow2.f32 %v1181_v30  ;;  %v1124_v21 = vmin.f32 %v2174_v14, 0.0  ;;  %1350 = vst [vmem:[%s2222_s26 + $0x48] sm:$0xff] (%p1767_p5), %v1349_v54  ;;  %v1353_v56 = vld [vmem:[%s2023_s18 + $0x38] sm:$0xff] (%p1767_p5) }
 0x252   : > { %v1273_v20 = vsel %vm1241_vm5, %v2105_v19, %v1536_v11  ;;  %v1537_v35 = vadd.f32 -1.0, %v1663_v34  ;;  %1676 = vpow2.f32 %v1185_v57  ;;  %vm1244_vm8 = vcmp.gt.f32.partialorder %v2127_v50, 0.0  ;;  %v1355_v58 = vld [vmem:[%s2023_s18 + $0x40] sm:$0xff] (%p1767_p5)  ;;  %1352 = vst [vmem:[%s2222_s26 + $0x50] sm:$0xff] (%p1767_p5), %v1351_v55  ;;  %1354 = vst [vmem:[%s2222_s26 + $0x58] sm:$0xff] (%p1767_p5), %v1353_v56  ;;  %v1361_v62 = vld [vmem:[%s2023_s18 + $0x58] sm:$0xff] (%p1767_p5) }
 0x253   : > { %1305 = vst [vmem:[%s2023_s18 + $0xa0] sm:$0xff] %v1273_v20  ;;  %v1275_v23 = vsel %vm1243_vm6, %v2109_v60, %v1538_v15  ;;  %1678 = vpow2.f32 %v1183_v4  ;;  %v1187_v16 = vmul.f32 1.442695, %v1124_v21  ;;  %vm1245_vm9 = vcmp.gt.f32.partialorder %v2130_v0, 0.0  ;;  %1356 = vst [vmem:[%s2222_s26 + $0x80] sm:$0xff] (%p1767_p5), %v1355_v58  ;;  %v1363_v3 = vld [vmem:[%s2023_s18 + $0x60] sm:$0xff] (%p1767_p5) }
 0x254   : > { %v1665_v53 = vpop.eup %1664  ;;  %1307 = vst [vmem:[%s2023_s18 + $0xb0] sm:$0xff] %v1275_v23  ;;  %v1274_v39 = vsel %vm1242_vm7, %v2112_v22, %v1537_v35  ;;  %vm1247_vm10 = vcmp.gt.f32.partialorder %v2133_v31, 0.0  ;;  %vm1246_vm11 = vcmp.gt.f32.partialorder %v2136_v51, 0.0  ;;  %vm1248_vm12 = vcmp.gt.f32.partialorder %v2151_v18, 0.0  ;;  %1362 = vst [vmem:[%s2222_s26 + $0x98] sm:$0xff] (%p1767_p5), %v1361_v62  ;;  %v1369_v38 = vld [vmem:[%s2023_s18 + $0x78] sm:$0xff] (%p1767_p5) }
 0x255   : > { %v1667_v24 = vpop.eup %1666  ;;  %1306 = vst [vmem:[%s2023_s18 + $0xa8] sm:$0xff] %v1274_v39  ;;  %v1539_v19 = vadd.f32 -1.0, %v1665_v53  ;;  %1680 = vpow2.f32 %v1187_v16  ;;  %vm1249_vm13 = vcmp.gt.f32.partialorder %v2154_v59, 0.0  ;;  %vm1251_vm14 = vcmp.gt.f32.partialorder %v2159_v32, 0.0  ;;  %1364 = vst [vmem:[%s2222_s26 + $0xc0] sm:$0xff] (%p1767_p5), %v1363_v3  ;;  %v1371_v41 = vld [vmem:[%s2023_s18 + $0x80] sm:$0xff] (%p1767_p5) }
 0x256   : > { %v1669_v2 = vpop.eup %1668  ;;  %v1540_v25 = vadd.f32 -1.0, %v1667_v24  ;;  %vm1250_vm15 = vcmp.gt.f32.partialorder %v2162_v5, 0.0  ;;  %vm1252_vm0 = vcmp.gt.f32.partialorder %v2174_v14, 0.0  ;;  %v1373_v44 = vld [vmem:[%s2023_s18 + $0x88] sm:$0xff] (%p1767_p5)  ;;  %1370 = vst [vmem:[%s2222_s26 + $0xd8] sm:$0xff] (%p1767_p5), %v1369_v38  ;;  %1372 = vst [vmem:[%s2222_s26 + $0x100] sm:$0xff] (%p1767_p5), %v1371_v41 }
 0x257   : > { %v1671_v60 = vpop.eup %1670  ;;  %v1276_v26 = vsel %vm1244_vm8, %v2127_v50, %v1539_v19  ;;  %v1542_v7 = vadd.f32 -1.0, %v1669_v2  ;;  %1374 = vst [vmem:[%s2222_s26 + $0x108] sm:$0xff] (%p1767_p5), %v1373_v44  ;;  %v1375_v6 = vld [vmem:[%s2023_s18 + $0x90] sm:$0xff] (%p1767_p5)  ;;  %v1377_v40 = vld [vmem:[%s2023_s18 + $0x98] sm:$0xff] (%p1767_p5) }
 0x258   : > { %1308 = vst [vmem:[%s2023_s18 + $0xb8] sm:$0xff] %v1276_v26  ;;  %v1277_v22 = vsel %vm1245_vm9, %v2130_v0, %v1540_v25  ;;  %v1541_v48 = vadd.f32 -1.0, %v1671_v60  ;;  %1376 = vst [vmem:[%s2222_s26 + $0x110] sm:$0xff] (%p1767_p5), %v1375_v6 }
 0x259   : > { %1309 = vst [vmem:[%s2023_s18 + $0xc0] sm:$0xff] %v1277_v22  ;;  %v1279_v61 = vsel %vm1247_vm10, %v2133_v31, %v1542_v7  ;;  %1378 = vst [vmem:[%s2222_s26 + $0x118] sm:$0xff] (%p1767_p5), %v1377_v40 }
 0x25a   : > { %1311 = vst [vmem:[%s2023_s18 + $0xd0] sm:$0xff] %v1279_v61  ;;  %v1278_v27 = vsel %vm1246_vm11, %v2136_v51, %v1541_v48  ;;  %v1673_v28 = vpop.eup %1672  ;;  %v1379_v9 = vld [vmem:[%s2023_s18 + $0xa0] sm:$0xff] (%p1767_p5) }
 0x25b   : > { %1310 = vst [vmem:[%s2023_s18 + $0xc8] sm:$0xff] %v1278_v27  ;;  %v1675_v50 = vpop.eup %1674  ;;  %v1543_v29 = vadd.f32 -1.0, %v1673_v28  ;;  %1380 = vst [vmem:[%s2222_s26 + $0x140] sm:$0xff] (%p1767_p5), %v1379_v9  ;;  %v1383_v52 = vld [vmem:[%s2023_s18 + $0xb0] sm:$0xff] (%p1767_p5) }
 0x25c   : > { %v1677_v1 = vpop.eup %1676  ;;  %v1544_v0 = vadd.f32 -1.0, %v1675_v50  ;;  %v1381_v45 = vld [vmem:[%s2023_s18 + $0xa8] sm:$0xff] (%p1767_p5)  ;;  %1384 = vst [vmem:[%s2222_s26 + $0x150] sm:$0xff] (%p1767_p5), %v1383_v52 }
 0x25d   : > { %v1679_v37 = vpop.eup %1678  ;;  %v1280_v42 = vsel %vm1248_vm12, %v2151_v18, %v1543_v29  ;;  %v1546_v31 = vadd.f32 -1.0, %v1677_v1  ;;  %1323 = sbr.rel (!%p1767_p5) target bundleno = 620 (0x26c), region = 67  ;;  %v1357_v18 = vld [vmem:[%s2023_s18 + $0x48] sm:$0xff] (%p1767_p5)  ;;  %1382 = vst [vmem:[%s2222_s26 + $0x148] sm:$0xff] (%p1767_p5), %v1381_v45 }
 0x25e   : > { %1312 = vst [vmem:[%s2023_s18 + $0xd8] sm:$0xff] %v1280_v42  ;;  %v1281_v51 = vsel %vm1249_vm13, %v2154_v59, %v1544_v0  ;;  %v1545_v8 = vadd.f32 -1.0, %v1679_v37  ;;  %v1359_v59 = vld [vmem:[%s2023_s18 + $0x50] sm:$0xff] (%p1767_p5)  ;;  %1358 = vst [vmem:[%s2222_s26 + $0x88] sm:$0xff] (%p1767_p5), %v1357_v18 }
 0x25f   : > { %v1681_v33 = vpop.eup %1680  ;;  %1313 = vst [vmem:[%s2023_s18 + $0xe0] sm:$0xff] %v1281_v51  ;;  %v1283_v36 = vsel %vm1251_vm14, %v2159_v32, %v1546_v31  ;;  %1360 = vst [vmem:[%s2222_s26 + $0x90] sm:$0xff] (%p1767_p5), %v1359_v59  ;;  %v1365_v32 = vld [vmem:[%s2023_s18 + $0x68] sm:$0xff] (%p1767_p5)  ;;  %v1385_v10 = vld [vmem:[%s2023_s18 + $0xb8] sm:$0xff] (%p1767_p5) }
 0x260   : > { %1315 = vst [vmem:[%s2023_s18 + $0xf0] sm:$0xff] %v1283_v36  ;;  %v1282_v43 = vsel %vm1250_vm15, %v2162_v5, %v1545_v8  ;;  %v1547_v12 = vadd.f32 -1.0, %v1681_v33  ;;  %v1367_v5 = vld [vmem:[%s2023_s18 + $0x70] sm:$0xff] (%p1767_p5)  ;;  %1366 = vst [vmem:[%s2222_s26 + $0xc8] sm:$0xff] (%p1767_p5), %v1365_v32  ;;  %v1387_v11 = vld [vmem:[%s2023_s18 + $0xc0] sm:$0xff] (%p1767_p5) }
 0x261   : > { %1314 = vst [vmem:[%s2023_s18 + $0xe8] sm:$0xff] %v1282_v43  ;;  %1368 = vst [vmem:[%s2222_s26 + $0xd0] sm:$0xff] (%p1767_p5), %v1367_v5  ;;  %v1391_v57 = vld [vmem:[%s2023_s18 + $0xd0] sm:$0xff] (%p1767_p5) }
 0x262   : > { %v1284_v63 = vsel %vm1252_vm0, %v2174_v14, %v1547_v12  ;;  %1386 = vst [vmem:[%s2222_s26 + $0x158] sm:$0xff] (%p1767_p5), %v1385_v10  ;;  %v1389_v30 = vld [vmem:[%s2023_s18 + $0xc8] sm:$0xff] (%p1767_p5)  ;;  %1388 = vst [vmem:[%s2222_s26 + $0x180] sm:$0xff] (%p1767_p5), %v1387_v11 }
 0x263   : > { %1316 = vst [vmem:[%s2023_s18 + $0xf8] sm:$0xff] %v1284_v63  ;;  %1390 = vst [vmem:[%s2222_s26 + $0x188] sm:$0xff] (%p1767_p5), %v1389_v30 }
 0x264   : > { %1392 = vst [vmem:[%s2222_s26 + $0x190] sm:$0xff] %v1391_v57 }
 0x265   : > { %v1393_v14 = vld [vmem:[%s2023_s18 + $0xd8] sm:$0xff] }
 0x266   : > { %v1395_v34 = vld [vmem:[%s2023_s18 + $0xe0] sm:$0xff]  ;;  %1394 = vst [vmem:[%s2222_s26 + $0x198] sm:$0xff] %v1393_v14 }
 0x267   : > { %1396 = vst [vmem:[%s2222_s26 + $0x1c0] sm:$0xff] %v1395_v34  ;;  %v1399_v4 = vld [vmem:[%s2023_s18 + $0xf0] sm:$0xff] }
 0x268   : > { %v1397_v15 = vld [vmem:[%s2023_s18 + $0xe8] sm:$0xff]  ;;  %1400 = vst [vmem:[%s2222_s26 + $0x1d0] sm:$0xff] %v1399_v4 }
 0x269   : > { %1398 = vst [vmem:[%s2222_s26 + $0x1c8] sm:$0xff] %v1397_v15 }
 0x26a   : > { %v1401_v20 = vld [vmem:[%s2023_s18 + $0xf8] sm:$0xff] }
 0x26b   : > { %1402 = vst [vmem:[%s2222_s26 + $0x1d8] sm:$0xff] %v1401_v20 }
 0x26c PF: > { %p12_p10 = scmp.ge.s32.totalorder %s1754_s22, 4   ;;  %s2302_s18 = smov %s1700_s19 }
 0x26d   : > { %s2303_s19 = smov %s1765_s25  ;;  %s2304_s20 = smov %s1754_s22 }
 0x26e   :  { %14 = sbr.rel (!%p12_p10) target bundleno = 2 (0x2), region = 121 }

</bundles_post_ra>
